<compile_context>
chip_gen: v7x
topology: tpu7x:2x2x1
jax: 0.10.0
libtpu: 0.0.40
codegen_flags: <defaults>
</compile_context>

<pallas_src>
import functools

import jax
import jax.numpy as jnp
from jax.experimental import pallas as pl
from jax.experimental.pallas import tpu as pltpu

EPS = 1e-5
_MB = 1024 * 1024


# ------------------------------ small helpers -------------------------------

def _round_up(x, m):
    return (x + m - 1) // m * m


def _cdiv(a, b):
    return -(-a // b)


def _pad2(a, rows, cols):
    r, c = a.shape
    if r == rows and c == cols:
        return a
    return jnp.pad(a, ((0, rows - r), (0, cols - c)))


def _pad1(v, n):
    return v if v.shape[0] == n else jnp.pad(v, (0, n - v.shape[0]))


def _pick(dim, prefs):
    for t in prefs:
        if dim % t == 0:
            return t
    return dim


def _pick_tm(m):
    # Prefer tiles giving >=4 grid steps along M (pipeline depth + megacore),
    # but allow very large tiles when M is huge (amortize per-step overhead).
    for t in (1024, 512, 256, 128):
        if m >= 4 * t:
            return t
    for t in (512, 256, 128):
        if m >= 2 * t:
            return t
    return 128


def _vmem_limit(est_bytes):
    # Never below the 32 MiB scoped default (keeps small shapes identical to
    # the known-good config), never above v7x physical VMEM (64 MiB).
    return int(min(64 * _MB, max(32 * _MB, 2 * est_bytes)))


def _nbytes(a):
    return int(a.size) * a.dtype.itemsize


# --------------------- fused 1x1-conv (matmul) kernel ------------------------
# out = maybe_relu(x @ w + bias [+ xs @ ws] [+ residual]),
# K-tiled with an f32 VMEM accumulator.

def _fused_mm_kernel(*refs, relu, n_k, has_res, has_sc):
    it = iter(refs)
    x_ref, w_ref, b_ref = next(it), next(it), next(it)
    r_ref = next(it) if has_res else None
    if has_sc:
        xs_ref, ws_ref = next(it), next(it)
    o_ref, acc_ref = next(it), next(it)

    kk = pl.program_id(2)

    @pl.when(kk == 0)
    def _init():
        if has_sc:
            # Initialize with the projection-shortcut dot instead of zeros:
            # removes the zero-fill pass and moves the second matmul off the
            # last K step (shorter pipeline drain).
            acc_ref[...] = jnp.dot(xs_ref[...], ws_ref[...],
                                   preferred_element_type=jnp.float32)
        else:
            acc_ref[...] = jnp.zeros_like(acc_ref)

    acc_ref[...] += jnp.dot(x_ref[...], w_ref[...],
                            preferred_element_type=jnp.float32)

    @pl.when(kk == n_k - 1)
    def _finalize():
        out = acc_ref[...] + b_ref[...]
        if has_res:                          # identity shortcut, added in f32
            out = out + r_ref[...].astype(jnp.float32)
        if relu:
            out = jnp.maximum(out, 0.0)
        o_ref[...] = out.astype(o_ref.dtype)


def fused_matmul(x, w, bias, *, residual=None, shortcut=None, relu=True,
                 out_dtype=jnp.bfloat16):
    """Returns (M, round_up(N,128)); columns >= N are exact zeros."""
    m, k = x.shape
    assert w.shape[0] == k
    n = w.shape[1]

    np_ = _round_up(n, 128)              # lane-dense output width
    tn = _pick(np_, (512, 256, 128))
    tm = _pick_tm(m)
    mp = _round_up(m, tm)

    if k > 512:                          # tile K only when it is actually large
        kp = _round_up(k, 128)
        tk = _pick(kp, (512, 256, 128))
    else:
        kp = tk = k                      # full-extent K block (always legal)
    n_k = kp // tk

    xb = _pad2(x, mp, kp).astype(jnp.bfloat16)
    wb = _pad2(w, kp, np_).astype(jnp.bfloat16)
    bb = _pad2(bias.astype(jnp.float32).reshape(1, n), 1, np_)

    in_specs = [
        pl.BlockSpec((tm, tk), lambda i, j, kk: (i, kk)),
        pl.BlockSpec((tk, tn), lambda i, j, kk: (kk, j)),
        pl.BlockSpec((1, tn), lambda i, j, kk: (0, j)),
    ]
    args = [xb, wb, bb]

    has_res = residual is not None
    has_sc = shortcut is not None
    out_isz = jnp.dtype(out_dtype).itemsize
    vmem = (2 * (tm * tk + tk * tn) * 2 + 2 * tn * 4
            + 2 * tm * tn * out_isz + tm * tn * 4)
    flops = 2 * mp * np_ * kp

    if has_res:
        # residual stays f32: the add happens on the f32 accumulator.
        in_specs.append(pl.BlockSpec((tm, tn), lambda i, j, kk: (i, j)))
        args.append(_pad2(residual, mp, np_).astype(jnp.float32))
        vmem += 2 * tm * tn * 4
    if has_sc:
        xs, ws = shortcut
        ks = xs.shape[1]
        assert ws.shape[0] == ks
        in_specs.append(pl.BlockSpec((tm, ks), lambda i, j, kk: (i, 0)))
        in_specs.append(pl.BlockSpec((ks, tn), lambda i, j, kk: (0, j)))
        args.append(_pad2(xs, mp, ks).astype(jnp.bfloat16))
        args.append(_pad2(ws, ks, np_).astype(jnp.bfloat16))
        vmem += 2 * (tm * ks + ks * tn) * 2
        flops += 2 * mp * np_ * ks

    bytes_accessed = sum(_nbytes(a) for a in args) + mp * np_ * out_isz
    kernel = functools.partial(_fused_mm_kernel, relu=relu, n_k=n_k,
                               has_res=has_res, has_sc=has_sc)

    out = pl.pallas_call(
        kernel,
        out_shape=jax.ShapeDtypeStruct((mp, np_), out_dtype),
        grid_spec=pltpu.PrefetchScalarGridSpec(
            num_scalar_prefetch=0,
            grid=(mp // tm, np_ // tn, n_k),
            in_specs=in_specs,
            out_specs=pl.BlockSpec((tm, tn), lambda i, j, kk: (i, j)),
            scratch_shapes=[pltpu.VMEM((tm, tn), jnp.float32)],
        ),
        compiler_params=pltpu.CompilerParams(
            dimension_semantics=("parallel", "parallel", "arbitrary"),
            vmem_limit_bytes=_vmem_limit(vmem)),
        cost_estimate=pl.CostEstimate(flops=int(flops), transcendentals=0,
                                      bytes_accessed=int(bytes_accessed)),
    )(*args)
    return out[:m] if mp != m else out


# ------------------- fused 3x3 conv + BN + ReLU kernel -----------------------
# One image x one coutp-tile per grid step; 9 accumulating matmuls (one per
# tap) into an f32 VMEM accumulator. The padded image is row/col-permuted by
# residue mod stride in the wrapper (reshape/transpose, no gather) so each
# tap is a plain contiguous-lane VMEM slice.

def _conv3x3_kernel(xp_ref, w_ref, b_ref, o_ref, acc_ref,
                    *, stride, ho, wo, wo8):
    s = stride
    gh = xp_ref.shape[1] // s          # rows per residue group
    gw = xp_ref.shape[2] // s          # cols per residue group
    cp = xp_ref.shape[3]
    tn = acc_ref.shape[-1]
    for t in range(9):
        dh, dw = t // 3, t % 3
        r0 = (dh % s) * gh + dh // s
        c0 = (dw % s) * gw + dw // s
        # wo8 is a multiple of 8, so the (ho, wo8, cp) -> (ho*wo8, cp) reshape
        # is layout-preserving (no sublane relayout copy); columns >= wo hold
        # garbage but are never read back.
        tap = xp_ref[0, r0:r0 + ho, c0:c0 + wo8, :]
        mm = jnp.dot(tap.reshape(ho * wo8, cp), w_ref[t],
                     preferred_element_type=jnp.float32)
        if t == 0:
            acc_ref[...] = mm          # first tap writes directly: no zero-init
        else:
            acc_ref[...] += mm
    out = acc_ref[...].reshape(ho, wo8, tn)[:, :wo, :] + b_ref[...]
    o_ref[0] = jnp.maximum(out, 0.0).astype(o_ref.dtype)


def conv2_3x3_bn_relu(x_nhwc, w9, bias, stride):
    """3x3 / pad-1 / stride conv + folded-BN bias + ReLU.

    x_nhwc: (N, H, W, Cp) bf16 (channels already lane-padded).
    w9:     (9, Cin, Cout) f32, BN scale folded, tap order kh-major / kw-minor.
    Returns ((N, Ho, Wo, round_up(Cout,128)) bf16, Ho, Wo).
    """
    n, h, w, cp = x_nhwc.shape
    cin, cout = w9.shape[1], w9.shape[2]
    coutp = _round_up(cout, 128)
    s = stride
    ho = (h - 1) // s + 1
    wo = (w - 1) // s + 1
    wo8 = _round_up(wo, 8)

    # Residue-group geometry: gh/gw rows/cols per residue class, large enough
    # that every tap slice [r0:r0+ho, c0:c0+wo8] stays in bounds.
    gh = max(_cdiv(h + 2, s), ho + 2 // s)
    gw = max(_cdiv(w + 2, s), wo + 2 // s, wo8 + (2 if s == 1 else 0))
    hp, wp = s * gh, s * gw

    xp = jnp.pad(x_nhwc, ((0, 0), (1, hp - h - 1), (1, wp - w - 1), (0, 0)))
    if s > 1:
        # Residue permutation via reshape/transpose (no jnp.take gather):
        # permuted row (r % s)*gh + r//s  <-  original padded row r.
        xp = xp.reshape(n, gh, s, gw, s, cp)
        xp = xp.transpose(0, 2, 1, 4, 3, 5).reshape(n, hp, wp, cp)
    xp = xp.astype(jnp.bfloat16)

    w9p = jnp.pad(w9, ((0, 0), (0, cp - cin), (0, coutp - cout)))
    w9p = w9p.astype(jnp.bfloat16)
    bb = _pad1(bias.astype(jnp.float32), coutp).reshape(1, 1, coutp)

    tn = _pick(coutp, (256, 128))
    n_j = coutp // tn

    vmem = (2 * hp * wp * cp * 2        # double-buffered image block (bf16)
            + 2 * 9 * cp * tn * 2       # weights
            + 2 * tn * 4                # bias
            + 2 * ho * wo * tn * 2      # output tile (bf16)
            + ho * wo8 * tn * 4)        # f32 accumulator scratch
    flops = 2 * n * ho * wo * 9 * cp * coutp
    bytes_accessed = (_nbytes(xp) + n * 9 * cp * coutp * 2
                      + n * ho * wo * coutp * 2 + coutp * 4)

    kernel = functools.partial(_conv3x3_kernel, stride=s, ho=ho, wo=wo, wo8=wo8)
    out = pl.pallas_call(
        kernel,
        out_shape=jax.ShapeDtypeStruct((n, ho, wo, coutp), jnp.bfloat16),
        grid_spec=pltpu.PrefetchScalarGridSpec(
            num_scalar_prefetch=0,
            grid=(n, n_j),
            in_specs=[
                pl.BlockSpec((1, hp, wp, cp), lambda i, j: (i, 0, 0, 0)),
                pl.BlockSpec((9, cp, tn), lambda i, j: (0, 0, j)),
                pl.BlockSpec((1, 1, tn), lambda i, j: (0, 0, j)),
            ],
            out_specs=pl.BlockSpec((1, ho, wo, tn), lambda i, j: (i, 0, 0, j)),
            scratch_shapes=[pltpu.VMEM((ho * wo8, tn), jnp.float32)],
        ),
        compiler_params=pltpu.CompilerParams(
            dimension_semantics=("parallel", "parallel"),
            vmem_limit_bytes=_vmem_limit(vmem)),
        cost_estimate=pl.CostEstimate(flops=int(flops), transcendentals=0,
                                      bytes_accessed=int(bytes_accessed)),
    )(xp, w9p, bb)
    return out, ho, wo


# ------------------------------ forward pass --------------------------------

def _fold_bn(bn):
    scale = bn["gamma"] / jnp.sqrt(bn["var"] + EPS)
    bias = bn["beta"] - bn["mean"] * scale
    return scale, bias


def bottleneck_forward(x_nchw, params, stride):
    x = jnp.transpose(x_nchw, (0, 2, 3, 1))            # NHWC, f32
    n, h, w, c_in = x.shape
    planes = params["w1"].shape[0]
    c_exp = params["w3"].shape[0]
    cp = _round_up(planes, 128)                        # lane-dense hidden width

    s1, b1 = _fold_bn(params["bn1"])
    s2, b2 = _fold_bn(params["bn2"])
    s3, b3 = _fold_bn(params["bn3"])

    # Single f32->bf16 downcast of the input, reused by conv1 lhs and the
    # strided projection-shortcut lhs (halves wrapper-side bytes moved).
    x_bf = x.astype(jnp.bfloat16)

    # conv1 (1x1) + bn1 + relu -> (N*H*W, cp) bf16, columns >= planes are zero
    w1 = jnp.transpose(params["w1"][:, :, 0, 0], (1, 0)) * s1[None, :]
    y1 = fused_matmul(x_bf.reshape(n * h * w, c_in), w1, b1, relu=True)
    y1 = y1.reshape(n, h, w, cp)

    # conv2 (3x3, stride, pad 1) + bn2 + relu — 9 in-kernel taps, no HBM im2col
    w2 = jnp.transpose(params["w2"], (2, 3, 1, 0)).reshape(9, planes, planes)
    w2 = w2 * s2[None, None, :]
    y2, ho, wo = conv2_3x3_bn_relu(y1, w2, b2, stride)
    y2 = y2.reshape(n * ho * wo, cp)                   # free contiguous reshape

    # conv3 (1x1) + bn3 + shortcut + relu — fully fused epilogue, bf16 out
    w3 = jnp.transpose(params["w3"][:, :, 0, 0], (1, 0)) * s3[None, :]
    w3 = _pad2(w3, cp, c_exp)                          # zero rows for padded K
    if stride != 1 or c_in != c_exp:
        ss, bs = _fold_bn(params["bns"])
        ws = jnp.transpose(params["ws"][:, :, 0, 0], (1, 0)) * ss[None, :]
        xs = x_bf[:, ::stride, ::stride, :].reshape(n * ho * wo, c_in)
        y3 = fused_matmul(y2, w3, b3 + bs, relu=True, shortcut=(xs, ws))
    else:
        res = x.reshape(n * ho * wo, c_exp)            # identity residual in f32
        y3 = fused_matmul(y2, w3, b3, relu=True, residual=res)

    out = y3[:, :c_exp].reshape(n, ho, wo, c_exp)      # crop/reshape in bf16
    return jnp.transpose(out, (0, 3, 1, 2)).astype(jnp.float32)  # NCHW, f32


# --------------------------- reference (pure JAX) ----------------------------

def _ref_conv(x_nhwc, w_torch, stride, pad):
    w_hwio = jnp.transpose(w_torch, (2, 3, 1, 0))
    return jax.lax.conv_general_dilated(
        x_nhwc, w_hwio, (stride, stride), pad,
        dimension_numbers=("NHWC", "HWIO", "NHWC"))


def _ref_bn(x, bn):
    return (x - bn["mean"]) / jnp.sqrt(bn["var"] + EPS) * bn["gamma"] + bn["beta"]


def ref_forward(x_nchw, params, stride):
    x = jnp.transpose(x_nchw, (0, 2, 3, 1))
    c_in = x.shape[-1]
    c_exp = params["w3"].shape[0]
    out = jax.nn.relu(_ref_bn(_ref_conv(x, params["w1"], 1, [(0, 0), (0, 0)]),
                              params["bn1"]))
    out = jax.nn.relu(_ref_bn(_ref_conv(out, params["w2"], stride,
                                        [(1, 1), (1, 1)]), params["bn2"]))
    out = _ref_bn(_ref_conv(out, params["w3"], 1, [(0, 0), (0, 0)]),
                  params["bn3"])
    if stride != 1 or c_in != c_exp:
        sc = _ref_bn(_ref_conv(x, params["ws"], stride, [(0, 0), (0, 0)]),
                     params["bns"])
    else:
        sc = x
    out = jax.nn.relu(out + sc)
    return jnp.transpose(out, (0, 3, 1, 2))


# ------------------------------ param init -----------------------------------

def make_params(key, in_planes, planes, stride):
    expansion = 4
    keys = jax.random.split(key, 16)

    def bn(k, c):
        k1, k2, k3, k4 = jax.random.split(k, 4)
        return {
            "gamma": 1.0 + 0.1 * jax.random.normal(k1, (c,), jnp.float32),
            "beta": 0.1 * jax.random.normal(k2, (c,), jnp.float32),
            "mean": 0.1 * jax.random.normal(k3, (c,), jnp.float32),
            "var": 0.5 + jax.random.uniform(k4, (c,), jnp.float32),
        }

    params = {
        "w1": 0.1 * jax.random.normal(keys[0], (planes, in_planes, 1, 1), jnp.float32),
        "bn1": bn(keys[1], planes),
        "w2": 0.1 * jax.random.normal(keys[2], (planes, planes, 3, 3), jnp.float32),
        "bn2": bn(keys[3], planes),
        "w3": 0.1 * jax.random.normal(keys[4], (expansion * planes, planes, 1, 1), jnp.float32),
        "bn3": bn(keys[5], expansion * planes),
    }
    if stride != 1 or in_planes != expansion * planes:
        params["ws"] = 0.1 * jax.random.normal(
            keys[6], (expansion * planes, in_planes, 1, 1), jnp.float32)
        params["bns"] = bn(keys[7], expansion * planes)
    return params


# --------------------------------- main ---------------------------------------

if __name__ == "__main__":
    key = jax.random.PRNGKey(0)
    configs = [
        # (batch, in_planes, planes, spatial, stride)
        (2, 4, 4, 16, 2),    # projection shortcut: fused two-dot epilogue
        (2, 16, 4, 16, 1),   # identity shortcut: f32 residual-add epilogue
    ]
    for idx, (batch, in_planes, planes, spatial, stride) in enumerate(configs):
        k_x, k_p = jax.random.split(jax.random.fold_in(key, idx))
        x = jax.random.normal(k_x, (batch, in_planes, spatial, spatial),
                              jnp.float32)
        params = make_params(k_p, in_planes, planes, stride)

        out = jax.block_until_ready(bottleneck_forward(x, params, stride))
        ref = jax.block_until_ready(ref_forward(x, params, stride))

        exp_hw = (spatial - 1) // stride + 1
        assert out.shape == ref.shape == (batch, 4 * planes, exp_hw, exp_hw), out.shape
        # bf16 MXU operands / bf16 intermediates -> loosened tolerance vs f32 ref.
        assert jnp.allclose(out, ref, atol=5e-2, rtol=5e-2), float(
            jnp.max(jnp.abs(out - ref)))

    print("KERNEL_OK")
</pallas_src>

<mosaic_0001>
module attributes {stable_mosaic.version = 11 : i64} {
  func.func @_fused_mm_kernel(%arg0: i32, %arg1: i32, %arg2: i32, %arg3: memref<128x4xbf16, #tpu.memory_space<vmem>>, %arg4: memref<4x128xbf16, #tpu.memory_space<vmem>>, %arg5: memref<1x128xf32, #tpu.memory_space<vmem>>, %arg6: memref<128x128xbf16, #tpu.memory_space<vmem>>, %arg7: memref<128x128xf32, #tpu.memory_space<vmem>>) attributes {dimension_semantics = [#tpu.dimension_semantics<parallel>, #tpu.dimension_semantics<parallel>, #tpu.dimension_semantics<arbitrary>], iteration_bounds = array<i64: 4, 1, 1>, scalar_prefetch = 0 : i64, scratch_operands = 1 : i64, tpu.core_type = #tpu.core_type<tc>, window_params = [{transform_indices = @transform_0, window_bounds = array<i64: 128, 4>}, {transform_indices = @transform_1, window_bounds = array<i64: 4, 128>}, {transform_indices = @transform_2, window_bounds = array<i64: 1, 128>}, {transform_indices = @transform_3, window_bounds = array<i64: 128, 128>}]} {
    %c0_i32 = arith.constant 0 : i32
    %0 = arith.cmpi eq, %arg2, %c0_i32 : i32
    %1 = arith.extui %0 : i1 to i32
    %c0_i32_0 = arith.constant 0 : i32
    %2 = arith.cmpi ne, %1, %c0_i32_0 : i32
    scf.if %2 {
      %cst_10 = arith.constant 0.000000e+00 : f32
      %12 = vector.broadcast %cst_10 : f32 to vector<128x128xf32>
      %c0_11 = arith.constant 0 : index
      %c0_12 = arith.constant 0 : index
      %13 = vector.load %arg7[%c0_11, %c0_12] : memref<128x128xf32, #tpu.memory_space<vmem>>, vector<128x128xf32>
      tpu.vector_store %arg7[%c0_11, %c0_12], %12 {strides = array<i32>} : memref<128x128xf32, #tpu.memory_space<vmem>>, vector<128x128xf32>,
    } else {
    }
    %c0 = arith.constant 0 : index
    %c0_1 = arith.constant 0 : index
    %3 = vector.load %arg7[%c0, %c0_1] : memref<128x128xf32, #tpu.memory_space<vmem>>, vector<128x128xf32>
    %c0_2 = arith.constant 0 : index
    %c0_3 = arith.constant 0 : index
    %4 = vector.load %arg3[%c0_2, %c0_3] : memref<128x4xbf16, #tpu.memory_space<vmem>>, vector<128x4xbf16>
    %c0_4 = arith.constant 0 : index
    %c0_5 = arith.constant 0 : index
    %5 = vector.load %arg4[%c0_4, %c0_5] : memref<4x128xbf16, #tpu.memory_space<vmem>>, vector<4x128xbf16>
    %cst = arith.constant dense<0.000000e+00> : vector<128x128xf32>
    %6 = tpu.matmul %4, %5, %cst {dimension_numbers = #tpu.dot_dimension_numbers<[1], [0], [0], [1], [0, 0, 1, 1], [], []>} : vector<128x4xbf16>, vector<4x128xbf16>, vector<128x128xf32> -> vector<128x128xf32>
    %7 = arith.addf %3, %6 : vector<128x128xf32>
    %c0_6 = arith.constant 0 : index
    %c0_7 = arith.constant 0 : index
    %8 = vector.load %arg7[%c0_6, %c0_7] : memref<128x128xf32, #tpu.memory_space<vmem>>, vector<128x128xf32>
    tpu.vector_store %arg7[%c0_6, %c0_7], %7 {strides = array<i32>} : memref<128x128xf32, #tpu.memory_space<vmem>>, vector<128x128xf32>,
    %c0_i32_8 = arith.constant 0 : i32
    %9 = arith.cmpi eq, %arg2, %c0_i32_8 : i32
    %10 = arith.extui %9 : i1 to i32
    %c0_i32_9 = arith.constant 0 : i32
    %11 = arith.cmpi ne, %10, %c0_i32_9 : i32
    scf.if %11 {
      %c0_10 = arith.constant 0 : index
      %c0_11 = arith.constant 0 : index
      %12 = vector.load %arg7[%c0_10, %c0_11] : memref<128x128xf32, #tpu.memory_space<vmem>>, vector<128x128xf32>
      %c0_12 = arith.constant 0 : index
      %c0_13 = arith.constant 0 : index
      %13 = vector.load %arg5[%c0_12, %c0_13] : memref<1x128xf32, #tpu.memory_space<vmem>>, vector<1x128xf32>
      %14 = vector.broadcast %13 : vector<1x128xf32> to vector<128x128xf32>
      %15 = arith.addf %12, %14 : vector<128x128xf32>
      %cst_14 = arith.constant 0.000000e+00 : f32
      %16 = vector.broadcast %cst_14 : f32 to vector<128x128xf32>
      %17 = arith.maximumf %15, %16 : vector<128x128xf32>
      %18 = arith.truncf %17 : vector<128x128xf32> to vector<128x128xbf16>
      %c0_15 = arith.constant 0 : index
      %c0_16 = arith.constant 0 : index
      %19 = vector.load %arg6[%c0_15, %c0_16] : memref<128x128xbf16, #tpu.memory_space<vmem>>, vector<128x128xbf16>
      tpu.vector_store %arg6[%c0_15, %c0_16], %18 {strides = array<i32>} : memref<128x128xbf16, #tpu.memory_space<vmem>>, vector<128x128xbf16>,
    } else {
    }
    return
  }
  func.func @transform_0(%arg0: i32, %arg1: i32, %arg2: i32) -> (i32, i32) {
    %c0_i32 = arith.constant 0 : i32
    return %arg0, %arg2 : i32, i32
  }
  func.func @transform_1(%arg0: i32, %arg1: i32, %arg2: i32) -> (i32, i32) {
    %c0_i32 = arith.constant 0 : i32
    return %arg2, %arg1 : i32, i32
  }
  func.func @transform_2(%arg0: i32, %arg1: i32, %arg2: i32) -> (i32, i32) {
    %c0_i32 = arith.constant 0 : i32
    %c0_i32_0 = arith.constant 0 : i32
    return %c0_i32, %arg1 : i32, i32
  }
  func.func @transform_3(%arg0: i32, %arg1: i32, %arg2: i32) -> (i32, i32) {
    %c0_i32 = arith.constant 0 : i32
    return %arg0, %arg1 : i32, i32
  }
}

</mosaic_0001>

<bundles_post_ra>
// kernel: tpu_custom_call.1
= control target key start
LH: loop header
LB: loop body
LE: loop exit
PB: predicated region body
PF: predicated region fallthrough
CT: control target
= control target key end

     0   :  { %8 = vsyncpa [#allocation4], 0  ;;  %s1213_s0 = inlined_call_operand.vmem [shape: bf16[512,4], index: 0, kind: input, shape index: {}]   ;;  %s1214_s1 = inlined_call_operand.vmem [shape: bf16[4,128], index: 1, kind: input, shape index: {}]   ;;  %s1215_s2 = inlined_call_operand.vmem [shape: f32[1,128], index: 2, kind: input, shape index: {}]   ;;  %s1216_s3 = inlined_call_operand.hbm [shape: bf16[512,128], index: 3, kind: output, shape index: {}]  }
   0x1   :  { %10 = vsyncpa [#allocation4 + $0x1], 0  ;;  %s1070_s12 = smov 0   ;;  %s1072_s13 = smov 0  }
   0x2   :  { %s1074_s14 = smov 0   ;;  %s1076_s15 = smov 0  }
   0x3   :  { %s1078_s16 = smov 0   ;;  %s1080_s17 = smov 0  }
   0x4 LB: > { %s759_s18 = sadd.s32 4294967295, %s1045_s17   ;;  %s760_s19 = sadd.s32 4294967294, %s1045_s17   ;;  %s1045_s17 = sphi %s1080_s17, %s16_s17   ;;  %s1041_s16 = sphi %s1078_s16, %s1223_s16   ;;  %s1037_s15 = sphi %s1076_s15, %s1222_s15   ;;  %s1033_s14 = sphi %s1074_s14, %s1221_s14   ;;  %s1029_s13 = sphi %s1072_s13, %s1220_s13   ;;  %s1025_s12 = sphi %s1070_s12, %s1219_s12  }
   0x5   : > { %s35_s20 = sadd.s32 1, %s1041_s16  ;;  %s126_s21 = sadd.s32 1, %s1033_s14 }
   0x6   : > { %p37_p0 = scmp.ge.s32.totalorder %s35_s20, 4  ;;  %p136_p1 = scmp.ne.s32.totalorder %s1033_s14, %s1029_s13 }
   0x7   : > { %p137_p2 = scmp.eq.s32.totalorder %s759_s18, 3  ;;  %p142_p3 = scmp.ne.s32.totalorder %s1029_s13, %s1025_s12 }
   0x8   : > { %s1225_s20 = smov (%p37_p0, %s35_s20), 0  ;;  %p143_p5 = scmp.eq.s32.totalorder %s760_s19, 3 }
   0x9   : > { %p1110_p4 = por %p137_p2, %p136_p1  ;;  %s121_s23 = ssub.s32 %s1041_s16, %s1225_s20 }
   0xa   : > { %p765_p6 = scmp.ge.s32.totalorder %s1045_s17, 1  ;;  %p124_p7 = scmp.eq.s32.totalorder %s121_s23, 0 }
   0xb   : > { %p1117_p8 = por %p143_p5, %p142_p3  ;;  %p189_p9 = scmp.lt.s32.totalorder %s1045_s17, 5 }
   0xc   : > { %s1123_s25 = scalar_select %p124_p7, %s1033_s14, %s126_s21  }
   0xd   : > { %p190_p10 = pnand %p765_p6, %p189_p9 }
   0xe   : > { %v299_v0 = vld [vmem:[%s1214_s1] sm:$0x3] (!%p190_p10)  ;;  %vm365_vm0 = vcmask (!%p190_p10), 1041408   ;;  %s767_s28 = sshll.u32 (!%p190_p10), %s1037_s15, 4  ;;  %vm340_vm1 = vcmask (!%p190_p10), 31744   ;;  %s223_s8 = sand.u32 (!%p190_p10), 1, %s1029_s13  }
   0xf   : > { %193 = sbr.rel (%p190_p10) target bundleno = 272 (0x110), region = 32  ;;  %900 = vmatprep.subr.msk.bf16.mxu0 (!%p190_p10), %vm365_vm0, %v299_v0  ;;  %901 = vmatprep.subr.msk.bf16.mxu1 (!%p190_p10), %vm365_vm0, %v299_v0  ;;  %v367_v1 = vsel (!%p190_p10), %vm365_vm0, %v299_v0, 0  ;;  %p227_p11 = scmp.lt.s32.totalorder (!%p190_p10), %s767_s28, 63  ;;  %v785_v10 = vld [vmem:[%s1215_s2] ss:$0 sm:$0xff] (!%p190_p10) }
  0x10   : > { %881 = vmatpush3.bf16.msra.mxu0 (!%p190_p10), %v367_v1  ;;  %899 = vmatpush3.bf16.msra.mxu1 (!%p190_p10), %v367_v1  ;;  %s766_s9 = sshll.u32 (!%p190_p10), %s223_s8, 6  ;;  %s823_s11 = sshll.u32 (!%p190_p10), %s1037_s15, 10 }
  0x11   : > { %s1146_s10 = scalar_lea.vmem (!%p190_p10), [#allocation3], %s766_s9  ;;  %s1157_s23 = scalar_lea.hbm (!%p190_p10), %s1216_s3, %s823_s11 }
  0x12   : > { %s651_s18 = sshll.u32 (!%p190_p10), %s1146_s10, 4  ;;  %s1167_s15 = scalar_lea.sflag (!%p190_p10), [#allocation4], %s223_s8  ;;  %s1159_s18 = int_to_ptr.vmem [resolvable:$true] %s651_s18 }
  0x13   : > { %s967_s26 = scalar_lea.vmem (!%p190_p10), %s1159_s18, 1024  ;;  %s1047_s27 = smov (!%p190_p10), [#allocation3]  }
  0x14   : > { %p968_p12 = scmp.ne.s32.totalorder (!%p190_p10), %s1159_s18, %s967_s26 }
  0x16   : > { %s1227_s28 = smov (!%p227_p11, %s767_s28), 63  ;;  %p969_p13 = pnand %p968_p12, %p1110_p4 }
  0x17   : > { %s768_s29 = sshll.u32 %s1227_s28, 2  ;;  %s971_s28 = sshll.u32 %s1047_s27, 4  ;;  %s972_s28 = int_to_ptr.vmem [resolvable:$false] %s971_s28 }
  0x18   : > { %s233_s5 = scalar_lea.vmem %s1213_s0, %s768_s29  ;;  %p970_p0 = pneg %p969_p13 }
  0x19   : > { %v959_v2 = vld [vmem:[%s233_s5] sm:$0xff]   ;;  %v961_v4 = vld [vmem:[%s233_s5 + $0x8] sm:$0xff]   ;;  %v963_v6 = vld [vmem:[%s233_s5 + $0x10] sm:$0xff]   ;;  %s973_s29 = scalar_lea.vmem %s972_s28, 2048  ;;  %p974_p1 = scmp.lt.s32.totalorder %s1159_s18, %s972_s28 }
  0x1a   : > { %v960_v3 = vld [vmem:[%s233_s5 + $0x20] sm:$0xff]   ;;  %882 = vmatprep.mubr.msk.bf16.mxu0 %vm340_vm1, %v959_v2  ;;  %v962_v5 = vld [vmem:[%s233_s5 + $0x28] sm:$0xff]   ;;  %v964_v7 = vld [vmem:[%s233_s5 + $0x30] sm:$0xff]   ;;  %p975_p2 = scmp.lt.s32.totalorder %s973_s29, %s967_s26 }
  0x1b   : > { %890 = vmatprep.mubr.msk.bf16.mxu1 %vm340_vm1, %v960_v3  ;;  %883 = vmatmul.mubr.msk.bf16.vlgmr.msra.gmra.mrb[0].mxu0 %vm340_vm1, %v961_v4  ;;  %v965_v8 = vld [vmem:[%s233_s5 + $0x18] sm:$0xff]  }
  0x1c   : > { %891 = vmatmul.mubr.msk.bf16.vlgmr.msra.gmra.mrb[0].mxu1 %vm340_vm1, %v962_v5  ;;  %886 = vmatprep.mubr.msk.bf16.mxu0 %vm340_vm1, %v963_v6  ;;  %v966_v9 = vld [vmem:[%s233_s5 + $0x38] sm:$0xff]   ;;  %p976_p3 = por %p975_p2, %p974_p1 }
  0x1d   : > { %894 = vmatprep.mubr.msk.bf16.mxu1 %vm340_vm1, %v964_v7 }
  0x1e   : > { %p977_p5 = pnand %p976_p3, %p970_p0 }
  0x23   : > { %887 = vmatmul.mubr.msk.bf16.gmra.mrb[4].mxu0 %vm340_vm1, %v965_v8 }
  0x24   : > { %895 = vmatmul.mubr.msk.bf16.gmra.mrb[4].mxu1 %vm340_vm1, %v966_v9 }
  0xee   : > { %v884_v11 = vpop.f32.mrb[0].mxu0 }
  0xef   : > { %v526_v12 = vadd.f32 %v884_v11, %v785_v10  ;;  %v892_v13 = vpop.f32.mrb[0].mxu1  ;;  %v403_v14 = vpop.f32.mrb[1].mxu0 }
  0xf0   : > { %v534_v15 = vadd.f32 %v892_v13, %v785_v10  ;;  %v524_v16 = vadd.f32 %v785_v10, %v403_v14  ;;  %v435_v17 = vpop.f32.mrb[1].mxu1  ;;  %v885_v18 = vpop.f32.mrb[2].mxu0 }
  0xf1   : > { %v532_v19 = vadd.f32 %v785_v10, %v435_v17  ;;  %v527_v20 = vadd.f32 %v885_v18, %v785_v10  ;;  %v893_v21 = vpop.f32.mrb[2].mxu1  ;;  %v406_v22 = vpop.f32.mrb[3].mxu0  ;;  %v542_v26 = vmax.f32 %v526_v12, 0.0 }
  0xf2   : > { %v535_v23 = vadd.f32 %v893_v21, %v785_v10  ;;  %v525_v24 = vadd.f32 %v785_v10, %v406_v22  ;;  %v438_v25 = vpop.f32.mrb[3].mxu1  ;;  %v550_v29 = vmax.f32 %v534_v15, 0.0  ;;  %v540_v30 = vmax.f32 %v524_v16, 0.0 }
  0xf3   : > { %v543_v27 = vmax.f32 %v527_v20, 0.0  ;;  %v533_v28 = vadd.f32 %v785_v10, %v438_v25  ;;  %v548_v33 = vmax.f32 %v532_v19, 0.0 }
  0xf4   : > { %v551_v31 = vmax.f32 %v535_v23, 0.0  ;;  %v541_v32 = vmax.f32 %v525_v24, 0.0 }
  0xf5   : > { %v832_v34 = vpack.c.bf16 %v543_v27, %v542_v26  ;;  %v549_v35 = vmax.f32 %v533_v28, 0.0 }
  0xf6   : > { %v852_v36 = vpack.c.bf16 %v551_v31, %v550_v29  ;;  %v827_v37 = vpack.c.bf16 %v541_v32, %v540_v30  ;;  %v888_v38 = vpop.f32.mrb[4].mxu0 }
  0xf7   : > { %864 = vst [vmem:[%s1146_s10 + $0x8] sm:$0xff] %v832_v34   ;;  %v847_v39 = vpack.c.bf16 %v549_v35, %v548_v33  ;;  %v530_v40 = vadd.f32 %v888_v38, %v785_v10  ;;  %v896_v41 = vpop.f32.mrb[4].mxu1  ;;  %v419_v42 = vpop.f32.mrb[5].mxu0 }
  0xf8   : > { %868 = vst [vmem:[%s1146_s10 + $0x28] sm:$0xff] %v852_v36   ;;  %828 = vst [vmem:[%s1146_s10] sm:$0xff] %v827_v37   ;;  %v538_v43 = vadd.f32 %v896_v41, %v785_v10  ;;  %v528_v44 = vadd.f32 %v785_v10, %v419_v42  ;;  %v451_v45 = vpop.f32.mrb[5].mxu1  ;;  %v889_v46 = vpop.f32.mrb[6].mxu0 }
  0xf9   : > { %867 = vst [vmem:[%s1146_s10 + $0x20] sm:$0xff] %v847_v39   ;;  %v536_v47 = vadd.f32 %v785_v10, %v451_v45  ;;  %v531_v48 = vadd.f32 %v889_v46, %v785_v10  ;;  %v897_v49 = vpop.f32.mrb[6].mxu1  ;;  %v422_v50 = vpop.f32.mrb[7].mxu0  ;;  %v546_v54 = vmax.f32 %v530_v40, 0.0 }
  0xfa   : > { %v539_v51 = vadd.f32 %v897_v49, %v785_v10  ;;  %v529_v52 = vadd.f32 %v785_v10, %v422_v50  ;;  %v454_v53 = vpop.f32.mrb[7].mxu1  ;;  %v554_v57 = vmax.f32 %v538_v43, 0.0  ;;  %v544_v58 = vmax.f32 %v528_v44, 0.0 }
  0xfb   : > { %v547_v55 = vmax.f32 %v531_v48, 0.0  ;;  %v537_v56 = vadd.f32 %v785_v10, %v454_v53  ;;  %v552_v61 = vmax.f32 %v536_v47, 0.0 }
  0xfc   : > { %v555_v59 = vmax.f32 %v539_v51, 0.0  ;;  %v545_v60 = vmax.f32 %v529_v52, 0.0 }
  0xfd   : > { %v842_v62 = vpack.c.bf16 %v547_v55, %v546_v54  ;;  %v553_v63 = vmax.f32 %v537_v56, 0.0 }
  0xfe   : > { %v862_v0 = vpack.c.bf16 %v555_v59, %v554_v57  ;;  %v837_v1 = vpack.c.bf16 %v545_v60, %v544_v58 }
  0xff   : > { %866 = vst [vmem:[%s1146_s10 + $0x18] sm:$0xff] %v842_v62   ;;  %v857_v2 = vpack.c.bf16 %v553_v63, %v552_v61 }
 0x100   : > { %870 = vst [vmem:[%s1146_s10 + $0x38] sm:$0xff] %v862_v0   ;;  %865 = vst [vmem:[%s1146_s10 + $0x10] sm:$0xff] %v837_v1  }
 0x101   : > { %869 = vst [vmem:[%s1146_s10 + $0x30] sm:$0xff] %v857_v2  }
 0x102   : > { %980 = shalt.err (!%p977_p5)
}
 0x103   : > { %s981_s30 = scalar_lea.hbm %s1157_s23, 1024  ;;  %s985_s6 = scalar_lea.hbm %s1216_s3, 4096 }
 0x104   : > { %p982_p6 = scmp.ne.s32.totalorder %s1157_s23, %s981_s30  ;;  %p986_p10 = scmp.lt.u32.totalorder %s1157_s23, %s1216_s3 }
 0x105   : > { %p987_p11 = scmp.lt.u32.totalorder %s985_s6, %s981_s30  ;;  %p989_p13 = scmp.lt.u32.totalorder %s981_s30, %s1157_s23 }
 0x106   : > { %p983_p7 = pnand %p982_p6, %p1110_p4 }
 0x107   : > { %p988_p12 = por %p987_p11, %p986_p10 }
 0x108   : > { %p984_p9 = pneg %p983_p7 }
 0x109   : > { %p990_p0 = por %p989_p13, %p988_p12 }
 0x10b   : > { %p991_p1 = pnand %p990_p0, %p984_p9 }
 0x10d   : > { %994 = shalt.err (!%p991_p1)
}
 0x10e   : > { %s1048_s9 = smov 64   ;;  %s1049_s10 = smov 4  }
 0x10f   : > { %902 = dma.vmem_to_hbm [thread:$0]  (%p1110_p4), %s1159_s18, 1024, %s1157_s23, %s1167_s15, %s1048_s9, %s1048_s9, %s1049_s10  }
 0x110 PF: > { %p908_p2 = scmp.ge.s32.totalorder %s1045_s17, 2  ;;  %s666_s11 = sand.u32 1, %s1025_s12  }
 0x111   : > { %s667_s19 = scalar_lea.sflag [#allocation4], %s666_s11 }
 0x112   : > { %p905_p3 = pnand %p908_p2, %p1117_p8 }
 0x114   : > { %1020 = dma.done.wait (!%p905_p3), %s667_s19, 1024  }
 0x115   : > { %1022 = vsyncadd (!%p905_p3), %s667_s19, 4294966272  ;;  %s16_s17 = sadd.s32 1, %s1045_s17   ;;  %s1219_s12 = smov %s1029_s13 }
 0x116   : > { %p13_p5 = scmp.ge.s32.totalorder %s16_s17, 6   ;;  %s1220_s13 = smov %s1033_s14 }
 0x117   : > { %s1221_s14 = smov %s1123_s25  ;;  %s1222_s15 = smov %s1041_s16 }
 0x118   : > { %s1223_s16 = smov %s1225_s20  ;;  %15 = sbr.rel (!%p13_p5) target bundleno = 4 (0x4), region = 81 }
 0x11f   :  { %672 = vsyncpa [#allocation4], 1 }
 0x120   :  { %674 = vsyncpa [#allocation4 + $0x1], 1 }

</bundles_post_ra>
